<compile_context>
chip_gen: v5e
topology: v5e:2x2
jax: 0.10.0
libtpu: 0.0.40
codegen_flags: <defaults>
</compile_context>

<pallas_src>
import functools

import jax
import jax.numpy as jnp
from jax.experimental import pallas as pl
from jax.experimental.pallas import tpu as pltpu

_LANES = 128
_SUBLANES = 8


def _round_up(x: int, m: int) -> int:
    return -(-x // m) * m


def _smooth_l1_sum_kernel(pred_ref, tgt_ref, out_ref, acc_ref, *, block_rows):
    """Per-block SmoothL1 (beta=1.0) folded into a single (8,128) accumulator."""
    j = pl.program_id(1)

    @pl.when(j == 0)
    def _():
        acc_ref[...] = jnp.zeros_like(acc_ref)

    d = pred_ref[...].astype(jnp.float32) - tgt_ref[...].astype(jnp.float32)
    ad = jnp.abs(d)
    # Branch-free SmoothL1 (beta = 1.0):
    #   |d| <  1 : m = |d| -> 0.5*d^2
    #   |d| >= 1 : m = 1   -> 0.5 + (|d| - 1) = |d| - 0.5
    m = jnp.minimum(ad, 1.0)
    loss = 0.5 * m * m + (ad - m)

    # vreg-granular fold: (block_rows,128) -> (block_rows//8, 8, 128), sum over
    # the leading axis (pure VPU adds), then add into the single-vreg acc.
    groups = block_rows // _SUBLANES
    acc_ref[...] += jnp.sum(loss.reshape(groups, _SUBLANES, _LANES), axis=0)

    @pl.when(j == pl.num_programs(1) - 1)
    def _():
        # One small cross-lane/sublane reduce (8x128) per core, per kernel.
        out_ref[0, 0] = jnp.sum(acc_ref[...])


def stable_bbox_loss(pred_boxes: jax.Array, target_boxes: jax.Array,
                     *, max_block_rows: int = 8192) -> jax.Array:
    """Pallas implementation of StableBBoxLoss.forward: mean SmoothL1 over [N, 4]."""
    assert pred_boxes.shape == target_boxes.shape
    n, c = pred_boxes.shape
    assert c == 4, "boxes must be [N, 4]"
    total_count = n * c

    p = pred_boxes.reshape(-1)
    t = target_boxes.reshape(-1)

    # Lane-dense [rows, 128] layout; rows is a sublane multiple.
    rows = _round_up(_round_up(total_count, _LANES) // _LANES, _SUBLANES)
    max_block_rows = max(_SUBLANES, _round_up(max_block_rows, _SUBLANES))
    block_rows = min(rows, max_block_rows)
    num_blocks = -(-rows // block_rows)

    # Split across the two v7x TensorCores when there is more than one block
    # (no-op serialization on single-TC v5e/v6e).
    num_partials = 2 if num_blocks >= 2 else 1
    rows = _round_up(rows, num_partials * block_rows)
    num_blocks = rows // block_rows
    blocks_per_core = num_blocks // num_partials

    padded_elems = rows * _LANES
    pad = padded_elems - total_count
    if pad:
        # Identical zero padding on both inputs -> diff 0 -> zero loss.
        p = jnp.pad(p, (0, pad))
        t = jnp.pad(t, (0, pad))
    p = p.reshape(rows, _LANES)
    t = t.reshape(rows, _LANES)

    kernel = functools.partial(_smooth_l1_sum_kernel, block_rows=block_rows)

    # 2 inputs x 2 pipeline buffers x block bytes, plus slack for the tiny
    # accumulator / output. Fits v5e/v6e (128 MiB) and v7x (64 MiB) physical VMEM.
    block_bytes = block_rows * _LANES * 4
    vmem_limit = max(4 * block_bytes + (2 << 20), 16 << 20)

    cost = pl.CostEstimate(
        flops=8 * padded_elems,
        transcendentals=0,
        bytes_accessed=2 * padded_elems * 4,
    )

    in_map = lambda core, j: (core * blocks_per_core + j, 0)

    partials = pl.pallas_call(
        kernel,
        out_shape=jax.ShapeDtypeStruct((num_partials, 1), jnp.float32),
        grid_spec=pltpu.PrefetchScalarGridSpec(
            num_scalar_prefetch=0,
            grid=(num_partials, blocks_per_core),
            in_specs=[
                pl.BlockSpec((block_rows, _LANES), in_map),
                pl.BlockSpec((block_rows, _LANES), in_map),
            ],
            # Each core owns its own (1,1) SMEM output block -> no races on v7x.
            out_specs=pl.BlockSpec((1, 1), lambda core, j: (core, 0),
                                   memory_space=pltpu.SMEM),
            # Single-vreg accumulator (per core).
            scratch_shapes=[pltpu.VMEM((_SUBLANES, _LANES), jnp.float32)],
        ),
        compiler_params=pltpu.CompilerParams(
            dimension_semantics=("parallel", "arbitrary"),
            vmem_limit_bytes=vmem_limit,
            allow_input_fusion=[True, True],
        ),
        cost_estimate=cost,
    )(p, t)

    # Sum the per-core partials and normalize by the true element count.
    return jnp.sum(partials) / total_count


def _reference(pred, tgt):
    d = pred.astype(jnp.float32) - tgt.astype(jnp.float32)
    ad = jnp.abs(d)
    loss = jnp.where(ad < 1.0, 0.5 * d * d, ad - 0.5)
    return loss.mean()


if __name__ == "__main__":
    key = jax.random.PRNGKey(0)

    # 1) Small case matching the module: N boxes of 4 coords.
    k1, k2 = jax.random.split(key)
    N = 64
    pred_boxes = jax.random.normal(k1, (N, 4), dtype=jnp.float32) * 2.0
    target_boxes = jax.random.normal(k2, (N, 4), dtype=jnp.float32) * 2.0
    loss = stable_bbox_loss(pred_boxes, target_boxes)
    jax.block_until_ready(loss)
    ref = _reference(pred_boxes, target_boxes)
    assert jnp.allclose(loss, ref, rtol=1e-5, atol=1e-5), (loss, ref)

    # 2) Non-divisible N + forced tiny blocks: exercises padding, the
    #    multi-step accumulator path, and the 2-way parallel (per-core) split.
    k3, k4 = jax.random.split(k2)
    N2 = 1000
    pred2 = jax.random.normal(k3, (N2, 4), dtype=jnp.float32) * 3.0
    tgt2 = jax.random.normal(k4, (N2, 4), dtype=jnp.float32) * 3.0
    loss2 = stable_bbox_loss(pred2, tgt2, max_block_rows=8)
    jax.block_until_ready(loss2)
    ref2 = _reference(pred2, tgt2)
    assert jnp.allclose(loss2, ref2, rtol=1e-5, atol=1e-5), (loss2, ref2)

    # 3) Odd N with default block sizing (single block, heavy padding).
    k5, k6 = jax.random.split(k4)
    N3 = 333
    pred3 = jax.random.normal(k5, (N3, 4), dtype=jnp.float32) * 5.0
    tgt3 = jax.random.normal(k6, (N3, 4), dtype=jnp.float32) * 5.0
    loss3 = stable_bbox_loss(pred3, tgt3)
    jax.block_until_ready(loss3)
    ref3 = _reference(pred3, tgt3)
    assert jnp.allclose(loss3, ref3, rtol=1e-5, atol=1e-5), (loss3, ref3)

    print("KERNEL_OK")
</pallas_src>

<mosaic_0001>
module attributes {stable_mosaic.version = 11 : i64} {
  func.func @_smooth_l1_sum_kernel(%arg0: i32, %arg1: i32, %arg2: memref<8x128xf32, #tpu.memory_space<vmem>>, %arg3: memref<8x128xf32, #tpu.memory_space<vmem>>, %arg4: memref<1x1xf32, #tpu.memory_space<smem>>, %arg5: memref<8x128xf32, #tpu.memory_space<vmem>>) attributes {dimension_semantics = [#tpu.dimension_semantics<parallel>, #tpu.dimension_semantics<arbitrary>], iteration_bounds = array<i64: 1, 1>, scalar_prefetch = 0 : i64, scratch_operands = 1 : i64, tpu.core_type = #tpu.core_type<tc>, window_params = [{transform_indices = @transform_0, window_bounds = array<i64: 8, 128>}, {transform_indices = @transform_1, window_bounds = array<i64: 8, 128>}, {transform_indices = @transform_2, window_bounds = array<i64: 1, 1>}]} {
    %c0_i32 = arith.constant 0 : i32
    %0 = arith.cmpi eq, %arg1, %c0_i32 : i32
    %1 = arith.extui %0 : i1 to i32
    %c0_i32_0 = arith.constant 0 : i32
    %2 = arith.cmpi ne, %1, %c0_i32_0 : i32
    scf.if %2 {
      %cst_12 = arith.constant 0.000000e+00 : f32
      %22 = vector.broadcast %cst_12 : f32 to vector<8x128xf32>
      %c0_13 = arith.constant 0 : index
      %c0_14 = arith.constant 0 : index
      %23 = vector.load %arg5[%c0_13, %c0_14] : memref<8x128xf32, #tpu.memory_space<vmem>>, vector<8x128xf32>
      tpu.vector_store %arg5[%c0_13, %c0_14], %22 {strides = array<i32>} : memref<8x128xf32, #tpu.memory_space<vmem>>, vector<8x128xf32>,
    } else {
    }
    %c0 = arith.constant 0 : index
    %c0_1 = arith.constant 0 : index
    %3 = vector.load %arg2[%c0, %c0_1] : memref<8x128xf32, #tpu.memory_space<vmem>>, vector<8x128xf32>
    %c0_2 = arith.constant 0 : index
    %c0_3 = arith.constant 0 : index
    %4 = vector.load %arg3[%c0_2, %c0_3] : memref<8x128xf32, #tpu.memory_space<vmem>>, vector<8x128xf32>
    %5 = arith.subf %3, %4 : vector<8x128xf32>
    %6 = math.absf %5 : vector<8x128xf32>
    %cst = arith.constant 1.000000e+00 : f32
    %7 = vector.broadcast %cst : f32 to vector<8x128xf32>
    %8 = arith.minimumf %6, %7 : vector<8x128xf32>
    %cst_4 = arith.constant 5.000000e-01 : f32
    %9 = vector.broadcast %cst_4 : f32 to vector<8x128xf32>
    %10 = arith.mulf %9, %8 : vector<8x128xf32>
    %11 = arith.mulf %10, %8 : vector<8x128xf32>
    %12 = arith.subf %6, %8 : vector<8x128xf32>
    %13 = arith.addf %11, %12 : vector<8x128xf32>
    %c0_5 = arith.constant 0 : index
    %c0_6 = arith.constant 0 : index
    %14 = vector.load %arg5[%c0_5, %c0_6] : memref<8x128xf32, #tpu.memory_space<vmem>>, vector<8x128xf32>
    %15 = vector.shape_cast %13 : vector<8x128xf32> to vector<1x8x128xf32>
    %cst_7 = arith.constant dense<0.000000e+00> : vector<8x128xf32>
    %16 = vector.multi_reduction <add>, %15, %cst_7 [0] : vector<1x8x128xf32> to vector<8x128xf32>
    %17 = arith.addf %14, %16 : vector<8x128xf32>
    %c0_8 = arith.constant 0 : index
    %c0_9 = arith.constant 0 : index
    %18 = vector.load %arg5[%c0_8, %c0_9] : memref<8x128xf32, #tpu.memory_space<vmem>>, vector<8x128xf32>
    tpu.vector_store %arg5[%c0_8, %c0_9], %17 {strides = array<i32>} : memref<8x128xf32, #tpu.memory_space<vmem>>, vector<8x128xf32>,
    %c0_i32_10 = arith.constant 0 : i32
    %19 = arith.cmpi eq, %arg1, %c0_i32_10 : i32
    %20 = arith.extui %19 : i1 to i32
    %c0_i32_11 = arith.constant 0 : i32
    %21 = arith.cmpi ne, %20, %c0_i32_11 : i32
    scf.if %21 {
      %c0_12 = arith.constant 0 : index
      %c0_13 = arith.constant 0 : index
      %22 = vector.load %arg5[%c0_12, %c0_13] : memref<8x128xf32, #tpu.memory_space<vmem>>, vector<8x128xf32>
      %23 = vector.shape_cast %22 : vector<8x128xf32> to vector<1x8x128xf32>
      %cst_14 = arith.constant dense<0.000000e+00> : vector<1xf32>
      %24 = vector.multi_reduction <add>, %23, %cst_14 [1, 2] : vector<1x8x128xf32> to vector<1xf32>
      %25 = vector.shape_cast %24 : vector<1xf32> to vector<1x1x1xf32>
      %26 = vector.extract %25[0, 0, 0] : f32 from vector<1x1x1xf32>
      %c0_15 = arith.constant 0 : index
      %c0_16 = arith.constant 0 : index
      %27 = memref.load %arg4[%c0_15, %c0_16] : memref<1x1xf32, #tpu.memory_space<smem>>
      memref.store %26, %arg4[%c0_15, %c0_16] : memref<1x1xf32, #tpu.memory_space<smem>>
    } else {
    }
    return
  }
  func.func @transform_0(%arg0: i32, %arg1: i32) -> (i32, i32) {
    %c1_i32 = arith.constant 1 : i32
    %0 = arith.muli %arg0, %c1_i32 : i32
    %1 = arith.addi %0, %arg1 : i32
    %c0_i32 = arith.constant 0 : i32
    %c0_i32_0 = arith.constant 0 : i32
    return %1, %c0_i32 : i32, i32
  }
  func.func @transform_1(%arg0: i32, %arg1: i32) -> (i32, i32) {
    %c1_i32 = arith.constant 1 : i32
    %0 = arith.muli %arg0, %c1_i32 : i32
    %1 = arith.addi %0, %arg1 : i32
    %c0_i32 = arith.constant 0 : i32
    %c0_i32_0 = arith.constant 0 : i32
    return %1, %c0_i32 : i32, i32
  }
  func.func @transform_2(%arg0: i32, %arg1: i32) -> (i32, i32) {
    %c0_i32 = arith.constant 0 : i32
    %c0_i32_0 = arith.constant 0 : i32
    return %arg0, %c0_i32 : i32, i32
  }
}

</mosaic_0001>

<bundles_post_ra>
// kernel: tpu_custom_call.1
= control target key start
LH: loop header
LB: loop body
LE: loop exit
PB: predicated region body
PF: predicated region fallthrough
CT: control target
= control target key end

     0   :  { %7 = vsyncpa [#allocation4], 0  ;;  %s196_s0 = inlined_call_operand.hbm [shape: f32[8,128], index: 0, kind: input, shape index: {}]   ;;  %s197_s1 = inlined_call_operand.hbm [shape: f32[8,128], index: 1, kind: input, shape index: {}]   ;;  %s198_s2 = inlined_call_operand.hbm [shape: f32[1,1], index: 2, kind: output, shape index: {}]  }
   0x1   :  { %8 = vsyncpa [#allocation7], 0 }
   0x2   :  { %9 = vsyncpa [#allocation5], 0  ;;  %s18_s11 = sshll.u32 %s196_s0, 4  ;;  %s169_s12 = smov [#allocation3]   ;;  %s19_s11 = int_to_ptr.hbm [resolvable:$true] %s18_s11 }
   0x3   :  { %s20_s13 = sshll.u32 %s169_s12, 4  ;;  %s32_s16 = sshll.u32 %s197_s1, 4  ;;  %s21_s13 = int_to_ptr.vmem [resolvable:$true] %s20_s13  ;;  %s33_s16 = int_to_ptr.hbm [resolvable:$true] %s32_s16 }
   0x4   :  { %23 = dma.hbm_to_vmem [thread:$0]  %s19_s11, 128, %s21_s13, [#allocation4]  }
   0x5   :  { %s170_s17 = smov [#allocation6]  }
   0x6   :  { %s34_s18 = sshll.u32 %s170_s17, 4  ;;  %s35_s18 = int_to_ptr.vmem [resolvable:$true] %s34_s18 }
   0x7   :  { %37 = dma.hbm_to_vmem [thread:$0]  %s33_s16, 128, %s35_s18, [#allocation7]  }
   0x8   :  { %163 = dma.done.wait [#allocation4], 128  }
   0x9   :  { %164 = vsyncadd [#allocation4], 4294967168 }
   0xa   :  { %165 = dma.done.wait [#allocation7], 128  }
   0xb   :  { %166 = vsyncadd [#allocation7], 4294967168  ;;  %v53_v0 = vld [vmem:[#allocation3] sm:$0xff]  ;;  %v54_v1 = vld [vmem:[#allocation6] sm:$0xff]  ;;  %s86_s19 = sshll.u32 %s198_s2, 4  ;;  %s171_s21 = smov [#allocation8]   ;;  %s87_s19 = int_to_ptr.hbm [resolvable:$true] %s86_s19 }
   0xc   :  { %v55_v2 = vsub.f32 %v53_v0, %v54_v1 }
   0xe   :  { %v56_v3 = vand.u32 2147483647, %v55_v2 }
  0x10   :  { %v57_v4 = vmin.f32 %v56_v3, 1.0 }
  0x12   :  { %v58_v5 = vmul.f32 0.5, %v57_v4  ;;  %v60_v6 = vsub.f32 %v56_v3, %v57_v4 }
  0x14   :  { %v59_v7 = vmul.f32 %v58_v5, %v57_v4 }
  0x16   :  { %v61_v8 = vadd.f32 %v60_v6, %v59_v7 }
  0x18   :  { %70 = vadd.xlane.f32.xlu0 %v61_v8 }
  0x8b   :  { %v71_v9 = vpop.xlane.xlu0 %70 }
  0x8c   :  { %v72_v10 = vrot.slane %v71_v9, 4 }
  0x8e   :  { %v73_v11 = vadd.f32 %v72_v10, %v71_v9 }
  0x90   :  { %v74_v12 = vrot.slane %v73_v11, 2 }
  0x92   :  { %v75_v13 = vadd.f32 %v74_v12, %v73_v11 }
  0x94   :  { %v76_v14 = vrot.slane %v75_v13, 1 }
  0x96   :  { %v77_v15 = vadd.f32 %v76_v14, %v75_v13 }
  0x98   :  { %98 = vpush %v77_v15 }
  0xc9   :  { %s99_s20 = spop %98 }
  0xca   :  { %80 = sst [smem:[#allocation8]] %s99_s20 }
  0xcb   :  { %89 = dma.smem_to_hbm %s171_s21, 16, %s87_s19, [#allocation5]  }
  0xcc   :  { %167 = dma.done.wait [#allocation5], 16  }
  0xcd   :  { %168 = vsyncadd [#allocation5], 4294967280 }
  0xce   :  { %94 = sfence }
  0xcf   :  { %95 = vsyncpa [#allocation4], 1 }
  0xd0   :  { %96 = vsyncpa [#allocation7], 1 }
  0xd1   :  { %97 = vsyncpa [#allocation5], 1 }

</bundles_post_ra>
